<compile_context>
chip_gen: v7x
topology: tpu7x:2x2x1
jax: 0.10.0
libtpu: 0.0.40
codegen_flags: <defaults>
</compile_context>

<pallas_src>
import functools

import jax
import jax.numpy as jnp
from jax.experimental import pallas as pl
from jax.experimental.pallas import tpu as pltpu


# --------------------------- in-kernel conv helper ---------------------------

def _conv_image(x_ref, w_ref, xp_ref, *, mode, K, dilation, pad, W, stacked):
    """Conv of one NCHW image with the spatial axis flattened onto lanes.

    x_ref : [Cin, H*W]                activation block (lane dim = H*W)
    w_ref : [Cout, K*Cin] if stacked else [K, Cout, Cin]
    xp_ref: [Cin, H*W + 2*flat_pad]   VMEM zero-halo scratch (None iff pad == 0)
    returns [Cout, H*W] float32
    """
    Cin, HW = x_ref.shape
    stride_flat = 1 if mode == 1 else W           # lane step per unit conv offset
    flat_pad = pad * stride_flat

    if flat_pad == 0:                             # K == 1: plain pointwise conv
        taps = [x_ref[...]]
    else:
        zeros_halo = jnp.zeros((Cin, flat_pad), jnp.float32)
        xp_ref[:, :flat_pad] = zeros_halo                          # left halo
        xp_ref[:, flat_pad + HW:2 * flat_pad + HW] = zeros_halo    # right halo
        xp_ref[:, flat_pad:flat_pad + HW] = x_ref[...]             # interior

        wcoord = None
        if mode == 1:
            # w-coordinate of every flattened position, to mask row-boundary bleed
            # when shifting along W inside the flattened H*W axis.
            lane = jax.lax.broadcasted_iota(jnp.int32, (Cin, HW), 1)
            wcoord = lane % W

        taps = []
        for t in range(K):                        # static unroll (K is tiny)
            off = t * dilation - pad              # tap offset along the conv axis
            start = flat_pad + off * stride_flat  # >= 0 by construction
            tap = xp_ref[:, start:start + HW]     # [Cin, HW]
            if wcoord is not None and off != 0:
                valid = (wcoord >= -off) & (wcoord < W - off)
                tap = jnp.where(valid, tap, 0.0)
            taps.append(tap)

    if stacked:
        # Single MXU contraction over the K*Cin stacked taps.
        col = taps[0] if len(taps) == 1 else jnp.concatenate(taps, axis=0)
        return jnp.dot(w_ref[...], col, preferred_element_type=jnp.float32)

    # Fallback (Cin not sublane-aligned): K small matmuls, VPU accumulation.
    acc = jnp.zeros((w_ref.shape[1], HW), jnp.float32)
    for t in range(K):
        acc = acc + jnp.dot(w_ref[t], taps[t], preferred_element_type=jnp.float32)
    return acc


# ------------------------------- Pallas kernels -------------------------------

def _stats_kernel(x_ref, w_ref, sum_ref, ssq_ref, *scratch, conv):
    # Pass 1: conv + per-image per-channel sum / sum-of-squares (no y writeback).
    y = conv(x_ref, w_ref, scratch[0] if scratch else None)
    sum_ref[...] = jnp.sum(y, axis=1, keepdims=True)
    ssq_ref[...] = jnp.sum(y * y, axis=1, keepdims=True)


def _conv_bn_relu_kernel(x_ref, w_ref, scale_ref, bias_ref, o_ref, *scratch, conv):
    # Pass 2: recompute conv, fused normalize + affine + ReLU, NCHW-ordered store.
    y = conv(x_ref, w_ref, scratch[0] if scratch else None)
    o_ref[...] = jnp.maximum(y * scale_ref[...] + bias_ref[...], 0.0).astype(o_ref.dtype)


# --------------------------------- forward -----------------------------------

def conv_block_s_forward(x, weight, gamma, beta, *, kernel_size, mode,
                         dilation=1, eps=1e-5):
    """ConvBlock_S forward (conv -> train-mode BatchNorm2d -> ReLU), NCHW in/out."""
    # TODO(synk): groups > 1 not implemented (module default groups=1); odd
    # kernel_size assumed (the module's padding formula is 'same' only for odd k).
    N, Cin, H, W = x.shape
    Cout = weight.shape[0]
    K = kernel_size
    pad = ((K - 1) // 2) * dilation
    HW = H * W
    stride_flat = 1 if mode == 1 else W
    flat_pad = pad * stride_flat

    # Stacked single-matmul path needs sublane-aligned Cin for the tap concat.
    stacked = (Cin % 8 == 0) or (K == 1)

    xf = x.astype(jnp.float32).reshape(N, Cin, HW)                      # free reshape
    wf = weight.astype(jnp.float32).reshape(Cout, Cin, K)               # [Cout, Cin, K]
    if stacked:
        w_in = jnp.transpose(wf, (0, 2, 1)).reshape(Cout, K * Cin)      # [Cout, K*Cin]
        w_spec = pl.BlockSpec((Cout, K * Cin), lambda n: (0, 0))
    else:
        w_in = jnp.transpose(wf, (2, 0, 1))                             # [K, Cout, Cin]
        w_spec = pl.BlockSpec((K, Cout, Cin), lambda n: (0, 0, 0))

    conv = functools.partial(_conv_image, mode=mode, K=K, dilation=dilation,
                             pad=pad, W=W, stacked=stacked)
    x_spec = pl.BlockSpec((None, Cin, HW), lambda n: (n, 0, 0))
    cparams = pltpu.CompilerParams(dimension_semantics=("parallel",))
    scratch = ([pltpu.VMEM((Cin, HW + 2 * flat_pad), jnp.float32)]
               if flat_pad > 0 else [])

    # ---- pass 1: BN batch statistics fused with the conv (x read once) ----
    sums, ssqs = pl.pallas_call(
        functools.partial(_stats_kernel, conv=conv),
        out_shape=(jax.ShapeDtypeStruct((N, Cout, 1), jnp.float32),
                   jax.ShapeDtypeStruct((N, Cout, 1), jnp.float32)),
        grid_spec=pltpu.PrefetchScalarGridSpec(
            num_scalar_prefetch=0, grid=(N,),
            in_specs=[x_spec, w_spec],
            out_specs=(pl.BlockSpec((None, Cout, 1), lambda n: (n, 0, 0)),
                       pl.BlockSpec((None, Cout, 1), lambda n: (n, 0, 0))),
            scratch_shapes=scratch),
        compiler_params=cparams,
    )(xf, w_in)

    # Train-mode BatchNorm2d: biased batch stats over (N, H, W)  ->  scale / bias.
    cnt = jnp.float32(N * HW)
    mean = jnp.sum(sums[:, :, 0], axis=0) / cnt
    var = jnp.maximum(jnp.sum(ssqs[:, :, 0], axis=0) / cnt - mean * mean, 0.0)
    scale = gamma.astype(jnp.float32) / jnp.sqrt(var + eps)
    bias = beta.astype(jnp.float32) - mean * scale

    # ---- pass 2: fused conv + BN + ReLU, written directly in NCHW order ----
    out = pl.pallas_call(
        functools.partial(_conv_bn_relu_kernel, conv=conv),
        out_shape=jax.ShapeDtypeStruct((N, Cout, HW), x.dtype),
        grid_spec=pltpu.PrefetchScalarGridSpec(
            num_scalar_prefetch=0, grid=(N,),
            in_specs=[x_spec, w_spec,
                      pl.BlockSpec((Cout, 1), lambda n: (0, 0)),
                      pl.BlockSpec((Cout, 1), lambda n: (0, 0))],
            out_specs=pl.BlockSpec((None, Cout, HW), lambda n: (n, 0, 0)),
            scratch_shapes=scratch),
        compiler_params=cparams,
    )(xf, w_in, scale.reshape(Cout, 1), bias.reshape(Cout, 1))

    return out.reshape(N, Cout, H, W)                                   # free reshape


# ---------------------------- pure-JAX reference ------------------------------

def _reference_forward(x, weight, gamma, beta, *, kernel_size, mode, dilation=1, eps=1e-5):
    pad = ((kernel_size - 1) // 2) * dilation
    if mode == 1:
        padding = ((0, 0), (pad, pad)); rhs_dil = (1, dilation)
    else:
        padding = ((pad, pad), (0, 0)); rhs_dil = (dilation, 1)
    y = jax.lax.conv_general_dilated(
        x.astype(jnp.float32), weight.astype(jnp.float32),
        window_strides=(1, 1), padding=padding, rhs_dilation=rhs_dil,
        dimension_numbers=("NCHW", "OIHW", "NCHW"))
    mean = y.mean(axis=(0, 2, 3), keepdims=True)
    var = ((y - mean) ** 2).mean(axis=(0, 2, 3), keepdims=True)
    yn = (y - mean) / jnp.sqrt(var + eps)
    yn = yn * gamma.reshape(1, -1, 1, 1) + beta.reshape(1, -1, 1, 1)
    return jnp.maximum(yn, 0.0)


# ------------------------------------ main -------------------------------------

if __name__ == "__main__":
    key = jax.random.PRNGKey(0)
    N, H, W = 2, 16, 16
    kernel_size = 3

    # (C_in, C_out, dilation, mode): covers the stacked single-MXU-matmul path
    # (C_in % 8 == 0), the per-tap fallback path, both conv orientations, and dilation.
    cases = [
        (8, 16, 1, 1),
        (8, 16, 1, 2),
        (4, 8, 1, 1),
        (4, 8, 1, 2),
        (8, 16, 2, 2),
    ]

    ok = True
    for idx, (C_in, C_out, dilation, mode) in enumerate(cases):
        xkey, wkey = jax.random.split(jax.random.fold_in(key, idx))
        x = jax.random.normal(xkey, (N, C_in, H, W), dtype=jnp.float32)
        w_shape = ((C_out, C_in, 1, kernel_size) if mode == 1
                   else (C_out, C_in, kernel_size, 1))
        weight = 0.1 * jax.random.normal(wkey, w_shape, dtype=jnp.float32)
        gamma = jnp.ones((C_out,), dtype=jnp.float32)   # BatchNorm2d affine init
        beta = jnp.zeros((C_out,), dtype=jnp.float32)

        fwd = jax.jit(functools.partial(conv_block_s_forward, kernel_size=kernel_size,
                                        mode=mode, dilation=dilation))
        out = jax.block_until_ready(fwd(x, weight, gamma, beta))
        ref = _reference_forward(x, weight, gamma, beta, kernel_size=kernel_size,
                                 mode=mode, dilation=dilation)
        ok = ok and bool(jnp.allclose(out, ref, rtol=1e-4, atol=1e-4))

    print("KERNEL_OK" if ok else "MISMATCH")
</pallas_src>

<mosaic_0001>
module attributes {stable_mosaic.version = 11 : i64} {
  func.func @_stats_kernel(%arg0: i32, %arg1: memref<1x8x256xf32, #tpu.memory_space<vmem>>, %arg2: memref<16x24xf32, #tpu.memory_space<vmem>>, %arg3: memref<1x16x1xf32, #tpu.memory_space<vmem>>, %arg4: memref<1x16x1xf32, #tpu.memory_space<vmem>>, %arg5: memref<8x258xf32, #tpu.memory_space<vmem>>) attributes {dimension_semantics = [#tpu.dimension_semantics<parallel>], iteration_bounds = array<i64: 2>, scalar_prefetch = 0 : i64, scratch_operands = 1 : i64, tpu.core_type = #tpu.core_type<tc>, window_params = [{transform_indices = @transform_0, window_bounds = array<i64: 1, 8, 256>}, {pipeline_mode = #tpu.pipeline_mode<synchronous>, transform_indices = @transform_1, window_bounds = array<i64: 16, 24>}, {transform_indices = @transform_2, window_bounds = array<i64: 1, 16, 1>}, {transform_indices = @transform_3, window_bounds = array<i64: 1, 16, 1>}]} {
    %cst = arith.constant 0.000000e+00 : f32
    %0 = vector.broadcast %cst : f32 to vector<8x1xf32>
    %c0 = arith.constant 0 : index
    %c0_0 = arith.constant 0 : index
    %1 = vector.load %arg5[%c0, %c0_0] : memref<8x258xf32, #tpu.memory_space<vmem>>, vector<8x1xf32>
    tpu.vector_store %arg5[%c0, %c0_0], %0 {strides = array<i32>} : memref<8x258xf32, #tpu.memory_space<vmem>>, vector<8x1xf32>,
    %c0_1 = arith.constant 0 : index
    %c257 = arith.constant 257 : index
    %2 = vector.load %arg5[%c0_1, %c257] : memref<8x258xf32, #tpu.memory_space<vmem>>, vector<8x1xf32>
    tpu.vector_store %arg5[%c0_1, %c257], %0 {strides = array<i32>} : memref<8x258xf32, #tpu.memory_space<vmem>>, vector<8x1xf32>,
    %c0_2 = arith.constant 0 : index
    %c0_3 = arith.constant 0 : index
    %c0_4 = arith.constant 0 : index
    %3 = vector.load %arg1[%c0_2, %c0_3, %c0_4] : memref<1x8x256xf32, #tpu.memory_space<vmem>>, vector<1x8x256xf32>
    %4 = vector.shape_cast %3 : vector<1x8x256xf32> to vector<8x256xf32>
    %c0_5 = arith.constant 0 : index
    %c1 = arith.constant 1 : index
    %5 = vector.load %arg5[%c0_5, %c1] : memref<8x258xf32, #tpu.memory_space<vmem>>, vector<8x256xf32>
    tpu.vector_store %arg5[%c0_5, %c1], %4 {strides = array<i32>} : memref<8x258xf32, #tpu.memory_space<vmem>>, vector<8x256xf32>,
    %6 = tpu.iota {dimensions = array<i32: 1>} : vector<8x256xi32>
    %c16_i32 = arith.constant 16 : i32
    %c0_i32 = arith.constant 0 : i32
    %7 = arith.cmpi eq, %c16_i32, %c0_i32 : i32
    %c1_i32 = arith.constant 1 : i32
    %8 = arith.select %7, %c1_i32, %c16_i32 : i32
    %9 = vector.broadcast %8 : i32 to vector<8x256xi32>
    %10 = arith.remsi %6, %9 : vector<8x256xi32>
    %c0_i32_6 = arith.constant 0 : i32
    %11 = vector.broadcast %c0_i32_6 : i32 to vector<8x256xi32>
    %12 = arith.cmpi ne, %10, %11 : vector<8x256xi32>
    %c0_i32_7 = arith.constant 0 : i32
    %13 = vector.broadcast %c0_i32_7 : i32 to vector<8x256xi32>
    %14 = arith.cmpi slt, %10, %13 : vector<8x256xi32>
    %c0_i32_8 = arith.constant 0 : i32
    %15 = arith.cmpi slt, %8, %c0_i32_8 : i32
    %16 = vector.broadcast %15 : i1 to vector<8x256xi1>
    %17 = vector.broadcast %16 : vector<8x256xi1> to vector<8x256xi1>
    %18 = arith.xori %14, %17 : vector<8x256xi1>
    %19 = arith.andi %18, %12 : vector<8x256xi1>
    %20 = vector.broadcast %8 : i32 to vector<8x256xi32>
    %21 = arith.addi %10, %20 : vector<8x256xi32>
    %22 = arith.select %19, %21, %10 : vector<8x256xi1>, vector<8x256xi32>
    %c0_9 = arith.constant 0 : index
    %c0_10 = arith.constant 0 : index
    %23 = vector.load %arg5[%c0_9, %c0_10] : memref<8x258xf32, #tpu.memory_space<vmem>>, vector<8x256xf32>
    %c1_i32_11 = arith.constant 1 : i32
    %24 = vector.broadcast %c1_i32_11 : i32 to vector<8x256xi32>
    %25 = arith.cmpi sge, %22, %24 : vector<8x256xi32>
    %c17_i32 = arith.constant 17 : i32
    %26 = vector.broadcast %c17_i32 : i32 to vector<8x256xi32>
    %27 = arith.cmpi slt, %22, %26 : vector<8x256xi32>
    %28 = arith.andi %25, %27 : vector<8x256xi1>
    %cst_12 = arith.constant 0.000000e+00 : f32
    %29 = vector.broadcast %cst_12 : f32 to vector<8x256xf32>
    %30 = arith.select %28, %23, %29 : vector<8x256xi1>, vector<8x256xf32>
    %c0_13 = arith.constant 0 : index
    %c1_14 = arith.constant 1 : index
    %31 = vector.load %arg5[%c0_13, %c1_14] : memref<8x258xf32, #tpu.memory_space<vmem>>, vector<8x256xf32>
    %c0_15 = arith.constant 0 : index
    %c2 = arith.constant 2 : index
    %32 = vector.load %arg5[%c0_15, %c2] : memref<8x258xf32, #tpu.memory_space<vmem>>, vector<8x256xf32>
    %c-1_i32 = arith.constant -1 : i32
    %33 = vector.broadcast %c-1_i32 : i32 to vector<8x256xi32>
    %34 = arith.cmpi sge, %22, %33 : vector<8x256xi32>
    %c15_i32 = arith.constant 15 : i32
    %35 = vector.broadcast %c15_i32 : i32 to vector<8x256xi32>
    %36 = arith.cmpi slt, %22, %35 : vector<8x256xi32>
    %37 = arith.andi %34, %36 : vector<8x256xi1>
    %cst_16 = arith.constant 0.000000e+00 : f32
    %38 = vector.broadcast %cst_16 : f32 to vector<8x256xf32>
    %39 = arith.select %37, %32, %38 : vector<8x256xi1>, vector<8x256xf32>
    %40 = tpu.concatenate %30, %31, %39 in 0 : vector<8x256xf32>, vector<8x256xf32>, vector<8x256xf32> -> vector<24x256xf32>
    %c0_17 = arith.constant 0 : index
    %c0_18 = arith.constant 0 : index
    %41 = vector.load %arg2[%c0_17, %c0_18] : memref<16x24xf32, #tpu.memory_space<vmem>>, vector<16x24xf32>
    %cst_19 = arith.constant dense<0.000000e+00> : vector<16x256xf32>
    %42 = tpu.matmul %41, %40, %cst_19 {dimension_numbers = #tpu.dot_dimension_numbers<[1], [0], [0], [1], [0, 0, 1, 1], [], []>} : vector<16x24xf32>, vector<24x256xf32>, vector<16x256xf32> -> vector<16x256xf32>
    %cst_20 = arith.constant dense<0.000000e+00> : vector<16xf32>
    %43 = vector.multi_reduction <add>, %42, %cst_20 [1] : vector<16x256xf32> to vector<16xf32>
    %44 = vector.shape_cast %43 : vector<16xf32> to vector<16x1xf32>
    %c0_21 = arith.constant 0 : index
    %c0_22 = arith.constant 0 : index
    %c0_23 = arith.constant 0 : index
    %45 = vector.load %arg3[%c0_21, %c0_22, %c0_23] : memref<1x16x1xf32, #tpu.memory_space<vmem>>, vector<1x16x1xf32>
    %46 = vector.shape_cast %45 : vector<1x16x1xf32> to vector<16x1xf32>
    %47 = vector.shape_cast %44 : vector<16x1xf32> to vector<1x16x1xf32>
    tpu.vector_store %arg3[%c0_21, %c0_22, %c0_23], %47 {strides = array<i32>} : memref<1x16x1xf32, #tpu.memory_space<vmem>>, vector<1x16x1xf32>,
    %48 = arith.mulf %42, %42 : vector<16x256xf32>
    %cst_24 = arith.constant dense<0.000000e+00> : vector<16xf32>
    %49 = vector.multi_reduction <add>, %48, %cst_24 [1] : vector<16x256xf32> to vector<16xf32>
    %50 = vector.shape_cast %49 : vector<16xf32> to vector<16x1xf32>
    %c0_25 = arith.constant 0 : index
    %c0_26 = arith.constant 0 : index
    %c0_27 = arith.constant 0 : index
    %51 = vector.load %arg4[%c0_25, %c0_26, %c0_27] : memref<1x16x1xf32, #tpu.memory_space<vmem>>, vector<1x16x1xf32>
    %52 = vector.shape_cast %51 : vector<1x16x1xf32> to vector<16x1xf32>
    %53 = vector.shape_cast %50 : vector<16x1xf32> to vector<1x16x1xf32>
    tpu.vector_store %arg4[%c0_25, %c0_26, %c0_27], %53 {strides = array<i32>} : memref<1x16x1xf32, #tpu.memory_space<vmem>>, vector<1x16x1xf32>,
    return
  }
  func.func @transform_0(%arg0: i32) -> (i32, i32, i32) {
    %c0_i32 = arith.constant 0 : i32
    %c0_i32_0 = arith.constant 0 : i32
    %c0_i32_1 = arith.constant 0 : i32
    return %arg0, %c0_i32, %c0_i32_0 : i32, i32, i32
  }
  func.func @transform_1(%arg0: i32) -> (i32, i32) {
    %c0_i32 = arith.constant 0 : i32
    %c0_i32_0 = arith.constant 0 : i32
    %c0_i32_1 = arith.constant 0 : i32
    return %c0_i32, %c0_i32_0 : i32, i32
  }
  func.func @transform_2(%arg0: i32) -> (i32, i32, i32) {
    %c0_i32 = arith.constant 0 : i32
    %c0_i32_0 = arith.constant 0 : i32
    %c0_i32_1 = arith.constant 0 : i32
    return %arg0, %c0_i32, %c0_i32_0 : i32, i32, i32
  }
  func.func @transform_3(%arg0: i32) -> (i32, i32, i32) {
    %c0_i32 = arith.constant 0 : i32
    %c0_i32_0 = arith.constant 0 : i32
    %c0_i32_1 = arith.constant 0 : i32
    return %arg0, %c0_i32, %c0_i32_0 : i32, i32, i32
  }
}

module attributes {stable_mosaic.version = 11 : i64} {
  func.func @_conv_bn_relu_kernel(%arg0: i32, %arg1: memref<1x8x256xf32, #tpu.memory_space<vmem>>, %arg2: memref<16x24xf32, #tpu.memory_space<vmem>>, %arg3: memref<16x1xf32, #tpu.memory_space<vmem>>, %arg4: memref<16x1xf32, #tpu.memory_space<vmem>>, %arg5: memref<1x16x256xf32, #tpu.memory_space<vmem>>, %arg6: memref<8x258xf32, #tpu.memory_space<vmem>>) attributes {dimension_semantics = [#tpu.dimension_semantics<parallel>], iteration_bounds = array<i64: 2>, scalar_prefetch = 0 : i64, scratch_operands = 1 : i64, tpu.core_type = #tpu.core_type<tc>, window_params = [{transform_indices = @transform_0, window_bounds = array<i64: 1, 8, 256>}, {pipeline_mode = #tpu.pipeline_mode<synchronous>, transform_indices = @transform_1, window_bounds = array<i64: 16, 24>}, {pipeline_mode = #tpu.pipeline_mode<synchronous>, transform_indices = @transform_2, window_bounds = array<i64: 16, 1>}, {pipeline_mode = #tpu.pipeline_mode<synchronous>, transform_indices = @transform_3, window_bounds = array<i64: 16, 1>}, {transform_indices = @transform_4, window_bounds = array<i64: 1, 16, 256>}]} {
    %cst = arith.constant 0.000000e+00 : f32
    %0 = vector.broadcast %cst : f32 to vector<8x1xf32>
    %c0 = arith.constant 0 : index
    %c0_0 = arith.constant 0 : index
    %1 = vector.load %arg6[%c0, %c0_0] : memref<8x258xf32, #tpu.memory_space<vmem>>, vector<8x1xf32>
    tpu.vector_store %arg6[%c0, %c0_0], %0 {strides = array<i32>} : memref<8x258xf32, #tpu.memory_space<vmem>>, vector<8x1xf32>,
    %c0_1 = arith.constant 0 : index
    %c257 = arith.constant 257 : index
    %2 = vector.load %arg6[%c0_1, %c257] : memref<8x258xf32, #tpu.memory_space<vmem>>, vector<8x1xf32>
    tpu.vector_store %arg6[%c0_1, %c257], %0 {strides = array<i32>} : memref<8x258xf32, #tpu.memory_space<vmem>>, vector<8x1xf32>,
    %c0_2 = arith.constant 0 : index
    %c0_3 = arith.constant 0 : index
    %c0_4 = arith.constant 0 : index
    %3 = vector.load %arg1[%c0_2, %c0_3, %c0_4] : memref<1x8x256xf32, #tpu.memory_space<vmem>>, vector<1x8x256xf32>
    %4 = vector.shape_cast %3 : vector<1x8x256xf32> to vector<8x256xf32>
    %c0_5 = arith.constant 0 : index
    %c1 = arith.constant 1 : index
    %5 = vector.load %arg6[%c0_5, %c1] : memref<8x258xf32, #tpu.memory_space<vmem>>, vector<8x256xf32>
    tpu.vector_store %arg6[%c0_5, %c1], %4 {strides = array<i32>} : memref<8x258xf32, #tpu.memory_space<vmem>>, vector<8x256xf32>,
    %6 = tpu.iota {dimensions = array<i32: 1>} : vector<8x256xi32>
    %c16_i32 = arith.constant 16 : i32
    %c0_i32 = arith.constant 0 : i32
    %7 = arith.cmpi eq, %c16_i32, %c0_i32 : i32
    %c1_i32 = arith.constant 1 : i32
    %8 = arith.select %7, %c1_i32, %c16_i32 : i32
    %9 = vector.broadcast %8 : i32 to vector<8x256xi32>
    %10 = arith.remsi %6, %9 : vector<8x256xi32>
    %c0_i32_6 = arith.constant 0 : i32
    %11 = vector.broadcast %c0_i32_6 : i32 to vector<8x256xi32>
    %12 = arith.cmpi ne, %10, %11 : vector<8x256xi32>
    %c0_i32_7 = arith.constant 0 : i32
    %13 = vector.broadcast %c0_i32_7 : i32 to vector<8x256xi32>
    %14 = arith.cmpi slt, %10, %13 : vector<8x256xi32>
    %c0_i32_8 = arith.constant 0 : i32
    %15 = arith.cmpi slt, %8, %c0_i32_8 : i32
    %16 = vector.broadcast %15 : i1 to vector<8x256xi1>
    %17 = vector.broadcast %16 : vector<8x256xi1> to vector<8x256xi1>
    %18 = arith.xori %14, %17 : vector<8x256xi1>
    %19 = arith.andi %18, %12 : vector<8x256xi1>
    %20 = vector.broadcast %8 : i32 to vector<8x256xi32>
    %21 = arith.addi %10, %20 : vector<8x256xi32>
    %22 = arith.select %19, %21, %10 : vector<8x256xi1>, vector<8x256xi32>
    %c0_9 = arith.constant 0 : index
    %c0_10 = arith.constant 0 : index
    %23 = vector.load %arg6[%c0_9, %c0_10] : memref<8x258xf32, #tpu.memory_space<vmem>>, vector<8x256xf32>
    %c1_i32_11 = arith.constant 1 : i32
    %24 = vector.broadcast %c1_i32_11 : i32 to vector<8x256xi32>
    %25 = arith.cmpi sge, %22, %24 : vector<8x256xi32>
    %c17_i32 = arith.constant 17 : i32
    %26 = vector.broadcast %c17_i32 : i32 to vector<8x256xi32>
    %27 = arith.cmpi slt, %22, %26 : vector<8x256xi32>
    %28 = arith.andi %25, %27 : vector<8x256xi1>
    %cst_12 = arith.constant 0.000000e+00 : f32
    %29 = vector.broadcast %cst_12 : f32 to vector<8x256xf32>
    %30 = arith.select %28, %23, %29 : vector<8x256xi1>, vector<8x256xf32>
    %c0_13 = arith.constant 0 : index
    %c1_14 = arith.constant 1 : index
    %31 = vector.load %arg6[%c0_13, %c1_14] : memref<8x258xf32, #tpu.memory_space<vmem>>, vector<8x256xf32>
    %c0_15 = arith.constant 0 : index
    %c2 = arith.constant 2 : index
    %32 = vector.load %arg6[%c0_15, %c2] : memref<8x258xf32, #tpu.memory_space<vmem>>, vector<8x256xf32>
    %c-1_i32 = arith.constant -1 : i32
    %33 = vector.broadcast %c-1_i32 : i32 to vector<8x256xi32>
    %34 = arith.cmpi sge, %22, %33 : vector<8x256xi32>
    %c15_i32 = arith.constant 15 : i32
    %35 = vector.broadcast %c15_i32 : i32 to vector<8x256xi32>
    %36 = arith.cmpi slt, %22, %35 : vector<8x256xi32>
    %37 = arith.andi %34, %36 : vector<8x256xi1>
    %cst_16 = arith.constant 0.000000e+00 : f32
    %38 = vector.broadcast %cst_16 : f32 to vector<8x256xf32>
    %39 = arith.select %37, %32, %38 : vector<8x256xi1>, vector<8x256xf32>
    %40 = tpu.concatenate %30, %31, %39 in 0 : vector<8x256xf32>, vector<8x256xf32>, vector<8x256xf32> -> vector<24x256xf32>
    %c0_17 = arith.constant 0 : index
    %c0_18 = arith.constant 0 : index
    %41 = vector.load %arg2[%c0_17, %c0_18] : memref<16x24xf32, #tpu.memory_space<vmem>>, vector<16x24xf32>
    %cst_19 = arith.constant dense<0.000000e+00> : vector<16x256xf32>
    %42 = tpu.matmul %41, %40, %cst_19 {dimension_numbers = #tpu.dot_dimension_numbers<[1], [0], [0], [1], [0, 0, 1, 1], [], []>} : vector<16x24xf32>, vector<24x256xf32>, vector<16x256xf32> -> vector<16x256xf32>
    %c0_20 = arith.constant 0 : index
    %c0_21 = arith.constant 0 : index
    %43 = vector.load %arg3[%c0_20, %c0_21] : memref<16x1xf32, #tpu.memory_space<vmem>>, vector<16x1xf32>
    %44 = vector.broadcast %43 : vector<16x1xf32> to vector<16x256xf32>
    %45 = arith.mulf %42, %44 : vector<16x256xf32>
    %c0_22 = arith.constant 0 : index
    %c0_23 = arith.constant 0 : index
    %46 = vector.load %arg4[%c0_22, %c0_23] : memref<16x1xf32, #tpu.memory_space<vmem>>, vector<16x1xf32>
    %47 = vector.broadcast %46 : vector<16x1xf32> to vector<16x256xf32>
    %48 = arith.addf %45, %47 : vector<16x256xf32>
    %cst_24 = arith.constant 0.000000e+00 : f32
    %49 = vector.broadcast %cst_24 : f32 to vector<16x256xf32>
    %50 = arith.maximumf %48, %49 : vector<16x256xf32>
    %c0_25 = arith.constant 0 : index
    %c0_26 = arith.constant 0 : index
    %c0_27 = arith.constant 0 : index
    %51 = vector.load %arg5[%c0_25, %c0_26, %c0_27] : memref<1x16x256xf32, #tpu.memory_space<vmem>>, vector<1x16x256xf32>
    %52 = vector.shape_cast %51 : vector<1x16x256xf32> to vector<16x256xf32>
    %53 = vector.shape_cast %50 : vector<16x256xf32> to vector<1x16x256xf32>
    tpu.vector_store %arg5[%c0_25, %c0_26, %c0_27], %53 {strides = array<i32>} : memref<1x16x256xf32, #tpu.memory_space<vmem>>, vector<1x16x256xf32>,
    return
  }
  func.func @transform_0(%arg0: i32) -> (i32, i32, i32) {
    %c0_i32 = arith.constant 0 : i32
    %c0_i32_0 = arith.constant 0 : i32
    %c0_i32_1 = arith.constant 0 : i32
    return %arg0, %c0_i32, %c0_i32_0 : i32, i32, i32
  }
  func.func @transform_1(%arg0: i32) -> (i32, i32) {
    %c0_i32 = arith.constant 0 : i32
    %c0_i32_0 = arith.constant 0 : i32
    %c0_i32_1 = arith.constant 0 : i32
    return %c0_i32, %c0_i32_0 : i32, i32
  }
  func.func @transform_2(%arg0: i32) -> (i32, i32) {
    %c0_i32 = arith.constant 0 : i32
    %c0_i32_0 = arith.constant 0 : i32
    %c0_i32_1 = arith.constant 0 : i32
    return %c0_i32, %c0_i32_0 : i32, i32
  }
  func.func @transform_3(%arg0: i32) -> (i32, i32) {
    %c0_i32 = arith.constant 0 : i32
    %c0_i32_0 = arith.constant 0 : i32
    %c0_i32_1 = arith.constant 0 : i32
    return %c0_i32, %c0_i32_0 : i32, i32
  }
  func.func @transform_4(%arg0: i32) -> (i32, i32, i32) {
    %c0_i32 = arith.constant 0 : i32
    %c0_i32_0 = arith.constant 0 : i32
    %c0_i32_1 = arith.constant 0 : i32
    return %arg0, %c0_i32, %c0_i32_0 : i32, i32, i32
  }
}

</mosaic_0001>

<bundles_post_ra>
// kernel: conv_block_s_forward.2
= control target key start
LH: loop header
LB: loop body
LE: loop exit
PB: predicated region body
PF: predicated region fallthrough
CT: control target
= control target key end

     0   :  { %s552_s12 = smov 0   ;;  %s590_s0 = inlined_call_operand.vmem [shape: f32[2,8,256], index: 0, kind: input, shape index: {}]   ;;  %s591_s1 = inlined_call_operand.vmem [shape: f32[16,24], index: 1, kind: input, shape index: {}]   ;;  %s592_s2 = inlined_call_operand.vmem [shape: f32[2,16,1], index: 2, kind: output, shape index: {0}]   ;;  %s593_s3 = inlined_call_operand.vmem [shape: f32[2,16,1], index: 3, kind: output, shape index: {1}]  }
   0x1 LB: > { %s469_s13 = sadd.s32 4294967295, %s525_s12   ;;  %p473_p0 = scmp.ge.s32.totalorder %s525_s12, 1  ;;  %s525_s12 = sphi %s552_s12, %s14_s12  }
   0x2   : > { %p140_p1 = scmp.lt.s32.totalorder %s525_s12, 3 }
   0x4   : > { %p141_p2 = pnand %p473_p0, %p140_p1 }
   0x5   : > { %p169_p3 = scmp.lt.s32.totalorder (!%p141_p2), %s469_s13, 1  ;;  %vm184_vm0 = vcmask (!%p141_p2), 7168   ;;  %vm186_vm1 = vcmask (!%p141_p2), 15368   ;;  %v527_v0 = vmov (!%p141_p2), 0.0   ;;  %s528_s18 = smov (!%p141_p2), 1   ;;  %vm200_vm2 = vcmask (!%p141_p2), 1047560  }
   0x6   : > { %144 = sbr.rel (%p141_p2) target bundleno = 635 (0x27b), region = 28  ;;  %185 = vst.msk [vmem:[#allocation2] sm:$0xff] (!%p141_p2), %vm184_vm0, %v527_v0  ;;  %348 = vmatprep.mubr.f32.mxu0 (!%p141_p2), %v527_v0  ;;  %354 = vmatprep.mubr.f32.mxu1 (!%p141_p2), %v527_v0  ;;  %s529_s19 = smov (!%p141_p2), 126   ;;  %v204_v9 = vlaneseq (!%p141_p2)  ;;  %vm270_vm3 = vcmask (!%p141_p2), 1039360   ;;  %vm531_vm6 = vmmov (!%p141_p2), 1   ;;  %vm257_vm10 = vcmask (!%p141_p2), 1031168  }
   0x7   : > { %187 = vst.msk [vmem:[#allocation2 + $0x10] sm:$0xff] (!%p141_p2), %vm186_vm1, %v527_v0  ;;  %s530_s20 = smov (!%p141_p2), 127   ;;  %v275_v26 = vld [vmem:[%s591_s1] sm:$0xff] (!%p141_p2)  ;;  %vm277_vm12 = vcmask (!%p141_p2), 195584   ;;  %v276_v27 = vld [vmem:[%s591_s1 + $0x8] sm:$0xff] (!%p141_p2) }
   0x8   : > { %v205_v10 = vand.u32 (!%p141_p2), 127, %v204_v9 }
   0xa   : > { %v206_v11 = vadd.s32 (!%p141_p2), 128, %v205_v10  ;;  %v211_v13 = vand.u32 (!%p141_p2), 15, %v205_v10 }
   0xc   : > { %v218_v12 = vand.u32 (!%p141_p2), 15, %v206_v11  ;;  %vm233_vm5 = vcmp.ge.s32.totalorder (!%p141_p2), %v211_v13, 1  ;;  %vm244_vm11 = vcmp.lt.s32.totalorder (!%p141_p2), %v211_v13, 15 }
   0xd   : > { %s595_s13 = smov (!%p169_p3, %s469_s13), 1  ;;  %vm495_vm8 = vmpackc.low %vm531_vm6, %vm233_vm5 }
   0xe   : > { %s561_s14 = sshll.u32 %s595_s13, 4  ;;  %vm234_vm4 = vcmp.ge.s32.totalorder %v218_v12, 1  ;;  %vm245_vm9 = vcmp.lt.s32.totalorder %v218_v12, 15 }
   0xf   : > { %s173_s17 = scalar_lea.vmem %s590_s0, %s561_s14  ;;  %vm492_vm7 = vmpackc.low %vm531_vm6, %vm234_vm4  ;;  %s178_s27 = scalar_lea.vmem %s592_s2, %s561_s14 }
  0x10   : > { %v188_v1 = vld [vmem:[%s173_s17] sm:$0xff]  ;;  %v189_v2 = vld [vmem:[%s173_s17 + $0x8] sm:$0xff]  ;;  %s183_s30 = scalar_lea.vmem %s593_s3, %s561_s14 }
  0x11   : > { %192 = vrot.lane.b32.xlu0 %v188_v1, %s528_s18 }
  0x15   : > { %194 = vrot.lane.b32.xlu0 %v189_v2, %s528_s18 }
  0x83   : > { %v193_v3 = vpop.permute.xlu0 %192 }
  0x84   : > { %201 = vst.msk [vmem:[#allocation2] sm:$0xff] %vm200_vm2, %v193_v3 }
  0x87   : > { %v195_v4 = vpop.permute.xlu0 %194 }
  0x88   : > { %v196_v5 = vsel %vm184_vm0, %v193_v3, %v195_v4  ;;  %203 = vst.msk [vmem:[#allocation2 + $0x10] sm:$0xff] %vm184_vm0, %v195_v4 }
  0x89   : > { %253 = vrot.lane.b32.xlu0 %v196_v5, %s529_s19 }
  0x8b   : > { %v231_v6 = vld [vmem:[#allocation2] sm:$0xff] }
  0x8d   : > { %251 = vrot.lane.b32.xlu0 %v231_v6, %s529_s19 }
  0x8f   : > { %v241_v7 = vld [vmem:[#allocation2 + $0x10] sm:$0xff] }
  0x90   : > { %v514_v8 = vpack.i.bf16 %v241_v7, %v196_v5 }
  0x92   : > { %515 = vrot.lane.b32.xlu1 %v514_v8, %s530_s20 }
  0x96   : > { %264 = vrot.lane.b32.xlu1 %v231_v6, %s530_s20 }
  0x9a   : > { %255 = vrot.lane.b32.xlu1 %v241_v7, %s529_s19 }
  0xfb   : > { %v254_v17 = vpop.permute.xlu0 %253 }
  0xff   : > { %v252_v23 = vpop.permute.xlu0 %251 }
 0x100   : > { %v258_v28 = vsel %vm257_vm10, %v252_v23, %v254_v17 }
 0x104   : > { %v516_v14 = vpop.permute.xlu1 %515 }
 0x105   : > { %v518_v15 = vunpack.i.h.bf16 %v516_v14  ;;  %v517_v16 = vunpack.i.l.bf16 %v516_v14 }
 0x107   : > { %v272_v18 = vsel %vm270_vm3, %v517_v16, %v518_v15 }
 0x108   : > { %v265_v19 = vpop.permute.xlu1 %264  ;;  %v491_v20 = vpack.c.bf16 %v272_v18, %v196_v5 }
 0x109   : > { %v271_v21 = vsel %vm270_vm3, %v265_v19, %v517_v16 }
 0x10a   : > { %v494_v22 = vpack.c.bf16 %v271_v21, %v231_v6  ;;  %493 = vmatprep.subr.msk.bf16.mxu0 %vm492_vm7, %v491_v20  ;;  %497 = vmatprep.subr.msk.bf16.mxu1 %vm492_vm7, %v491_v20 }
 0x10c   : > { %v256_v24 = vpop.permute.xlu1 %255  ;;  %496 = vmatpush1.bf16.msk.msra.mxu0 %vm495_vm8, %v494_v22  ;;  %499 = vmatpush1.bf16.msk.msra.mxu1 %vm495_vm8, %v494_v22 }
 0x10d   : > { %v259_v25 = vsel %vm257_vm10, %v254_v17, %v256_v24 }
 0x10e   : > { %482 = vmatprep.subr.msk.mxu0 %vm245_vm9, %v259_v25  ;;  %498 = vmatprep.subr.msk.mxu1 %vm245_vm9, %v259_v25 }
 0x110   : > { %483 = vmatpush1.msk.msra.mxu0 %vm244_vm11, %v258_v28  ;;  %500 = vmatpush1.msk.msra.mxu1 %vm244_vm11, %v258_v28 }
 0x111   : > { %484 = vmatmul.mubr.msk.f32.vlgmr.msra.gmra.mrb[0].mxu0 %vm277_vm12, %v275_v26  ;;  %485 = vmatmul.mubr.msk.f32.vlgmr.msra.gmra.mrb[0].mxu1 %vm277_vm12, %v276_v27 }
 0x1e4   : > { %v350_v29 = vpop.f32.mrb[0].mxu0  ;;  %v356_v30 = vpop.f32.mrb[0].mxu1 }
 0x1e5   : > { %v369_v31 = vmul.f32 %v350_v29, %v350_v29  ;;  %v371_v32 = vmul.f32 %v356_v30, %v356_v30  ;;  %v352_v33 = vpop.f32.mrb[1].mxu0  ;;  %v358_v34 = vpop.f32.mrb[1].mxu1 }
 0x1e6   : > { %v361_v35 = vadd.f32 %v352_v33, %v350_v29  ;;  %v370_v36 = vmul.f32 %v352_v33, %v352_v33  ;;  %v364_v37 = vadd.f32 %v358_v34, %v356_v30  ;;  %v372_v38 = vmul.f32 %v358_v34, %v358_v34 }
 0x1e8   : > { %365 = vadd.xlane.f32.xlu0 %v364_v37  ;;  %362 = vadd.xlane.f32.xlu1 %v361_v35  ;;  %v373_v39 = vadd.f32 %v370_v36, %v369_v31  ;;  %v376_v40 = vadd.f32 %v372_v38, %v371_v32 }
 0x1ec   : > { %374 = vadd.xlane.f32.xlu0 %v373_v39  ;;  %377 = vadd.xlane.f32.xlu1 %v376_v40 }
 0x275   : > { %v366_v41 = vpop.xlane.xlu0 %365  ;;  %v363_v42 = vpop.xlane.xlu1 %362 }
 0x276   : > { %368 = vst.msk [vmem:[%s178_s27 + $0x8] sm:$0xff] %vm184_vm0, %v366_v41  ;;  %367 = vst.msk [vmem:[%s178_s27] sm:$0xff] %vm184_vm0, %v363_v42 }
 0x279   : > { %v375_v43 = vpop.xlane.xlu0 %374  ;;  %v378_v44 = vpop.xlane.xlu1 %377 }
 0x27a   : > { %379 = vst.msk [vmem:[%s183_s30] sm:$0xff] %vm184_vm0, %v375_v43  ;;  %380 = vst.msk [vmem:[%s183_s30 + $0x8] sm:$0xff] %vm184_vm0, %v378_v44 }
 0x27b PF: > { %s14_s12 = sadd.s32 1, %s525_s12  }
 0x27c   : > { %p11_p4 = scmp.ge.s32.totalorder %s14_s12, 4  }
 0x27e   :  { %13 = sbr.rel (!%p11_p4) target bundleno = 1 (0x1), region = 70 }

// kernel: conv_block_s_forward.3
= control target key start
LH: loop header
LB: loop body
LE: loop exit
PB: predicated region body
PF: predicated region fallthrough
CT: control target
= control target key end

     0   :  { %s559_s15 = smov 0   ;;  %s601_s0 = inlined_call_operand.vmem [shape: f32[2,8,256], index: 0, kind: input, shape index: {}]   ;;  %s602_s1 = inlined_call_operand.vmem [shape: f32[16,24], index: 1, kind: input, shape index: {}]   ;;  %s603_s2 = inlined_call_operand.vmem [shape: f32[16,1], index: 2, kind: input, shape index: {}]   ;;  %s604_s3 = inlined_call_operand.vmem [shape: f32[16,1], index: 3, kind: input, shape index: {}]   ;;  %s605_s4 = inlined_call_operand.vmem [shape: f32[2,16,256], index: 4, kind: output, shape index: {}]  }
   0x1 LB: > { %s470_s16 = sadd.s32 4294967295, %s526_s15   ;;  %p474_p0 = scmp.ge.s32.totalorder %s526_s15, 1  ;;  %s526_s15 = sphi %s559_s15, %s14_s15  }
   0x2   : > { %p162_p1 = scmp.lt.s32.totalorder %s526_s15, 3 }
   0x4   : > { %p163_p2 = pnand %p474_p0, %p162_p1 }
   0x5   : > { %p188_p3 = scmp.lt.s32.totalorder (!%p163_p2), %s470_s16, 1  ;;  %vm198_vm0 = vcmask (!%p163_p2), 7168   ;;  %vm200_vm1 = vcmask (!%p163_p2), 15368   ;;  %v528_v0 = vmov (!%p163_p2), 0.0   ;;  %s529_s21 = smov (!%p163_p2), 1   ;;  %vm214_vm2 = vcmask (!%p163_p2), 1047560  }
   0x6   : > { %166 = sbr.rel (%p163_p2) target bundleno = 493 (0x1ed), region = 36  ;;  %199 = vst.msk [vmem:[#allocation2] sm:$0xff] (!%p163_p2), %vm198_vm0, %v528_v0  ;;  %362 = vmatprep.mubr.f32.mxu0 (!%p163_p2), %v528_v0  ;;  %368 = vmatprep.mubr.f32.mxu1 (!%p163_p2), %v528_v0  ;;  %s530_s22 = smov (!%p163_p2), 126   ;;  %v532_v9 = vmov (!%p163_p2), 0   ;;  %v376_v10 = vld [vmem:[%s603_s2 + $0x8] sm:$0xff] (!%p163_p2)  ;;  %v375_v11 = vld [vmem:[%s603_s2] sm:$0xff] (!%p163_p2)  ;;  %v218_v14 = vlaneseq (!%p163_p2) }
   0x7   : > { %201 = vst.msk [vmem:[#allocation2 + $0x10] sm:$0xff] (!%p163_p2), %vm200_vm1, %v528_v0  ;;  %s531_s23 = smov (!%p163_p2), 127   ;;  %519 = vset.pattern.permute.xlu0 (!%p163_p2), %v532_v9  ;;  %518 = vset.pattern.permute.xlu1 (!%p163_p2), %v532_v9  ;;  %v391_v12 = vld [vmem:[%s604_s3] sm:$0xff] (!%p163_p2)  ;;  %v392_v13 = vld [vmem:[%s604_s3 + $0x8] sm:$0xff] (!%p163_p2)  ;;  %vm284_vm3 = vcmask (!%p163_p2), 1039360   ;;  %vm533_vm6 = vmmov (!%p163_p2), 1  }
   0x8   : > { %v219_v15 = vand.u32 (!%p163_p2), 127, %v218_v14  ;;  %vm271_vm10 = vcmask (!%p163_p2), 1031168   ;;  %v289_v31 = vld [vmem:[%s602_s1] sm:$0xff] (!%p163_p2)  ;;  %vm291_vm12 = vcmask (!%p163_p2), 195584   ;;  %v290_v32 = vld [vmem:[%s602_s1 + $0x8] sm:$0xff] (!%p163_p2) }
   0xa   : > { %v220_v16 = vadd.s32 (!%p163_p2), 128, %v219_v15  ;;  %v225_v18 = vand.u32 (!%p163_p2), 15, %v219_v15 }
   0xc   : > { %v232_v17 = vand.u32 (!%p163_p2), 15, %v220_v16  ;;  %vm247_vm5 = vcmp.ge.s32.totalorder (!%p163_p2), %v225_v18, 1  ;;  %vm258_vm11 = vcmp.lt.s32.totalorder (!%p163_p2), %v225_v18, 15 }
   0xd   : > { %s607_s16 = smov (!%p188_p3, %s470_s16), 1  ;;  %vm493_vm8 = vmpackc.low %vm533_vm6, %vm247_vm5 }
   0xe   : > { %s487_s17 = sshll.u32 %s607_s16, 4  ;;  %vm248_vm4 = vcmp.ge.s32.totalorder %v232_v17, 1  ;;  %vm259_vm9 = vcmp.lt.s32.totalorder %v232_v17, 15  ;;  %s488_s10 = sshll.u32 %s607_s16, 5 }
   0xf   : > { %s192_s20 = scalar_lea.vmem %s601_s0, %s487_s17  ;;  %vm490_vm7 = vmpackc.low %vm533_vm6, %vm248_vm4  ;;  %s197_s13 = scalar_lea.vmem %s605_s4, %s488_s10 }
  0x10   : > { %v202_v1 = vld [vmem:[%s192_s20] sm:$0xff]  ;;  %v203_v2 = vld [vmem:[%s192_s20 + $0x8] sm:$0xff] }
  0x11   : > { %206 = vrot.lane.b32.xlu0 %v202_v1, %s529_s21 }
  0x15   : > { %208 = vrot.lane.b32.xlu0 %v203_v2, %s529_s21 }
  0x83   : > { %v207_v3 = vpop.permute.xlu0 %206 }
  0x84   : > { %215 = vst.msk [vmem:[#allocation2] sm:$0xff] %vm214_vm2, %v207_v3 }
  0x87   : > { %v209_v4 = vpop.permute.xlu0 %208 }
  0x88   : > { %v210_v5 = vsel %vm198_vm0, %v207_v3, %v209_v4  ;;  %217 = vst.msk [vmem:[#allocation2 + $0x10] sm:$0xff] %vm198_vm0, %v209_v4 }
  0x89   : > { %267 = vrot.lane.b32.xlu0 %v210_v5, %s530_s22 }
  0x8b   : > { %v245_v6 = vld [vmem:[#allocation2] sm:$0xff] }
  0x8d   : > { %265 = vrot.lane.b32.xlu0 %v245_v6, %s530_s22 }
  0x8f   : > { %v255_v7 = vld [vmem:[#allocation2 + $0x10] sm:$0xff] }
  0x90   : > { %v513_v8 = vpack.i.bf16 %v255_v7, %v210_v5 }
  0x91   : > { %384 = vperm.xlu0 %519, %v376_v10  }
  0x92   : > { %514 = vrot.lane.b32.xlu1 %v513_v8, %s531_s23 }
  0x96   : > { %278 = vrot.lane.b32.xlu1 %v245_v6, %s531_s23 }
  0x9a   : > { %269 = vrot.lane.b32.xlu1 %v255_v7, %s530_s22 }
  0x9e   : > { %379 = vperm.xlu1 %518, %v375_v11  }
  0xa2   : > { %395 = vperm.xlu1 %518, %v391_v12  }
  0xa6   : > { %400 = vperm.xlu1 %518, %v392_v13  }
  0xfb   : > { %v268_v22 = vpop.permute.xlu0 %267 }
  0xff   : > { %v266_v28 = vpop.permute.xlu0 %265 }
 0x100   : > { %v272_v33 = vsel %vm271_vm10, %v266_v28, %v268_v22 }
 0x104   : > { %v515_v19 = vpop.permute.xlu1 %514 }
 0x105   : > { %v517_v20 = vunpack.i.h.bf16 %v515_v19  ;;  %v516_v21 = vunpack.i.l.bf16 %v515_v19 }
 0x107   : > { %v286_v23 = vsel %vm284_vm3, %v516_v21, %v517_v20 }
 0x108   : > { %v279_v24 = vpop.permute.xlu1 %278  ;;  %v489_v25 = vpack.c.bf16 %v286_v23, %v210_v5 }
 0x109   : > { %v285_v26 = vsel %vm284_vm3, %v279_v24, %v516_v21 }
 0x10a   : > { %v492_v27 = vpack.c.bf16 %v285_v26, %v245_v6  ;;  %491 = vmatprep.subr.msk.bf16.mxu0 %vm490_vm7, %v489_v25  ;;  %495 = vmatprep.subr.msk.bf16.mxu1 %vm490_vm7, %v489_v25 }
 0x10c   : > { %v270_v29 = vpop.permute.xlu1 %269  ;;  %494 = vmatpush1.bf16.msk.msra.mxu0 %vm493_vm8, %v492_v27  ;;  %497 = vmatpush1.bf16.msk.msra.mxu1 %vm493_vm8, %v492_v27 }
 0x10d   : > { %v273_v30 = vsel %vm271_vm10, %v268_v22, %v270_v29 }
 0x10e   : > { %481 = vmatprep.subr.msk.mxu0 %vm259_vm9, %v273_v30  ;;  %496 = vmatprep.subr.msk.mxu1 %vm259_vm9, %v273_v30 }
 0x110   : > { %482 = vmatpush1.msk.msra.mxu0 %vm258_vm11, %v272_v33  ;;  %498 = vmatpush1.msk.msra.mxu1 %vm258_vm11, %v272_v33  ;;  %v385_v36 = vpop.permute.xlu0 %384 }
 0x111   : > { %483 = vmatmul.mubr.msk.f32.vlgmr.msra.gmra.mrb[0].mxu0 %vm291_vm12, %v289_v31  ;;  %484 = vmatmul.mubr.msk.f32.vlgmr.msra.gmra.mrb[0].mxu1 %vm291_vm12, %v290_v32 }
 0x11d   : > { %v380_v34 = vpop.permute.xlu1 %379 }
 0x121   : > { %v396_v35 = vpop.permute.xlu1 %395 }
 0x125   : > { %v401_v43 = vpop.permute.xlu1 %400 }
 0x1e4   : > { %v364_v37 = vpop.f32.mrb[0].mxu0  ;;  %v370_v38 = vpop.f32.mrb[0].mxu1 }
 0x1e5   : > { %v387_v39 = vmul.f32 %v380_v34, %v364_v37  ;;  %v389_v40 = vmul.f32 %v385_v36, %v370_v38  ;;  %v366_v41 = vpop.f32.mrb[1].mxu0  ;;  %v372_v42 = vpop.f32.mrb[1].mxu1 }
 0x1e6   : > { %v388_v44 = vmul.f32 %v380_v34, %v366_v41  ;;  %v390_v45 = vmul.f32 %v385_v36, %v372_v42 }
 0x1e7   : > { %v403_v46 = vadd.f32 %v396_v35, %v387_v39  ;;  %v405_v47 = vadd.f32 %v401_v43, %v389_v40 }
 0x1e8   : > { %v404_v48 = vadd.f32 %v396_v35, %v388_v44  ;;  %v406_v49 = vadd.f32 %v401_v43, %v390_v45 }
 0x1e9   : > { %v407_v50 = vmax.f32 %v403_v46, 0.0  ;;  %v409_v51 = vmax.f32 %v405_v47, 0.0 }
 0x1ea   : > { %v408_v52 = vmax.f32 %v404_v48, 0.0  ;;  %v410_v53 = vmax.f32 %v406_v49, 0.0 }
 0x1eb   : > { %411 = vst [vmem:[%s197_s13] sm:$0xff] %v407_v50  ;;  %413 = vst [vmem:[%s197_s13 + $0x10] sm:$0xff] %v409_v51 }
 0x1ec   : > { %412 = vst [vmem:[%s197_s13 + $0x8] sm:$0xff] %v408_v52  ;;  %414 = vst [vmem:[%s197_s13 + $0x18] sm:$0xff] %v410_v53 }
 0x1ed PF: > { %s14_s15 = sadd.s32 1, %s526_s15  }
 0x1ee   : > { %p11_p4 = scmp.ge.s32.totalorder %s14_s15, 4  }
 0x1f0   :  { %13 = sbr.rel (!%p11_p4) target bundleno = 1 (0x1), region = 66 }

</bundles_post_ra>
